<compile_context>
chip_gen: v6e
topology: v6e:2x2x1
jax: 0.10.0
libtpu: 0.0.40
codegen_flags: <defaults>
</compile_context>

<pallas_src>
import jax
import jax.numpy as jnp
from jax.experimental import pallas as pl
from jax.experimental.pallas import tpu as pltpu


def _mlp_cast_kernel(x_ref, w1_ref, b1_ref, w2_ref, b2_ref, o_ref):
    # GEMM 1 (MXU): bf16 operands, f32 accumulation.  K=16 is tiny; the MXU
    # is never the binding slot here, so no padding of C_in.
    h = jnp.dot(x_ref[...], w1_ref[...], preferred_element_type=jnp.float32)
    h = h + b1_ref[...]
    # SiLU in f32 on VPU/EUP (safe on v5e which has no bf16 elementwise path).
    h = h * jax.nn.sigmoid(h)
    # GEMM 2 (MXU): cast activation to bf16 operand, accumulate in f32.
    y = jnp.dot(h.astype(jnp.bfloat16), w2_ref[...],
                preferred_element_type=jnp.float32)
    y = y + b2_ref[...]
    # The ".to(self.dtype)" cast happens only at the output store.
    o_ref[...] = y.astype(o_ref.dtype)


def to_weights_dtype_forward(x, w1, b1, w2, b2,
                             out_dtype=jnp.bfloat16, row_tile=256):
    """ToWeightsDType(TimestepEmbedding(in, hidden), out_dtype)(x).

    x: [B, C_in], w1: [C_in, H], b1: [H] or [1, H], w2: [H, H], b2: [H]/[1, H]
    """
    assert row_tile % 16 == 0
    B, C_in = x.shape
    H = w2.shape[1]

    # bf16 storage for the MXU operands (halves the dominant w2 DMA);
    # biases stay f32 (negligible bytes, added in f32).
    # TODO(synk): if w1/w2 are reused every UNet denoise step, keep them
    # resident across calls (P10-style prefetch) instead of re-casting here.
    xb = x.astype(jnp.bfloat16)
    w1b = w1.astype(jnp.bfloat16)
    w2b = w2.astype(jnp.bfloat16)
    b1f = b1.astype(jnp.float32).reshape(1, H)
    b2f = b2.astype(jnp.float32).reshape(1, H)

    # Pad rows to a multiple of 16 -> unmasked bf16 output stores.
    B_pad = -(-B // 16) * 16
    if B_pad > row_tile:
        B_pad = -(-B_pad // row_tile) * row_tile
    if B_pad != B:
        xb = jnp.pad(xb, ((0, B_pad - B), (0, 0)))

    if B_pad <= row_tile:
        # Single whole-array block, everything resident in VMEM, no grid.
        out = pl.pallas_call(
            _mlp_cast_kernel,
            out_shape=jax.ShapeDtypeStruct((B_pad, H), out_dtype),
            in_specs=[pl.BlockSpec(memory_space=pltpu.MemorySpace.VMEM)] * 5,
            out_specs=pl.BlockSpec(memory_space=pltpu.MemorySpace.VMEM),
        )(xb, w1b, b1f, w2b, b2f)
    else:
        # Batched call: tile rows; weights stay on the same block every step.
        grid = (B_pad // row_tile,)
        out = pl.pallas_call(
            _mlp_cast_kernel,
            out_shape=jax.ShapeDtypeStruct((B_pad, H), out_dtype),
            grid_spec=pltpu.PrefetchScalarGridSpec(
                num_scalar_prefetch=0,
                grid=grid,
                in_specs=[
                    pl.BlockSpec((row_tile, C_in), lambda i: (i, 0)),
                    pl.BlockSpec((C_in, H), lambda i: (0, 0)),
                    pl.BlockSpec((1, H), lambda i: (0, 0)),
                    pl.BlockSpec((H, H), lambda i: (0, 0)),
                    pl.BlockSpec((1, H), lambda i: (0, 0)),
                ],
                out_specs=pl.BlockSpec((row_tile, H), lambda i: (i, 0)),
            ),
            compiler_params=pltpu.CompilerParams(
                dimension_semantics=("parallel",)),
        )(xb, w1b, b1f, w2b, b2f)

    return out[:B] if B_pad != B else out


def _reference(x, w1, b1, w2, b2, out_dtype=jnp.bfloat16):
    # Emulates bf16 weight/activation storage (matching the kernel), f32 math.
    xf = x.astype(jnp.bfloat16).astype(jnp.float32)
    w1f = w1.astype(jnp.bfloat16).astype(jnp.float32)
    w2f = w2.astype(jnp.bfloat16).astype(jnp.float32)
    h = xf @ w1f + b1.reshape(1, -1)
    h = h * jax.nn.sigmoid(h)
    y = h.astype(jnp.bfloat16).astype(jnp.float32) @ w2f + b2.reshape(1, -1)
    return y.astype(out_dtype)


if __name__ == "__main__":
    # Small shapes consistent with the usage site
    # (TimestepEmbedding(16, hidden)); hidden kept lane-aligned at 256.
    B, C_IN, HID = 8, 16, 256

    key = jax.random.PRNGKey(0)
    k_x, k_w1, k_b1, k_w2, k_b2 = jax.random.split(key, 5)

    x = jax.random.normal(k_x, (B, C_IN), dtype=jnp.float32)
    w1 = jax.random.normal(k_w1, (C_IN, HID), dtype=jnp.float32) * 0.05
    b1 = jax.random.normal(k_b1, (1, HID), dtype=jnp.float32) * 0.01
    w2 = jax.random.normal(k_w2, (HID, HID), dtype=jnp.float32) * 0.05
    b2 = jax.random.normal(k_b2, (1, HID), dtype=jnp.float32) * 0.01

    # Small-B path (no grid, whole-array VMEM blocks).
    out = to_weights_dtype_forward(x, w1, b1, w2, b2)
    out = jax.block_until_ready(out)
    ref = _reference(x, w1, b1, w2, b2)
    assert out.dtype == jnp.bfloat16
    assert out.shape == (B, HID)
    assert jnp.allclose(out.astype(jnp.float32), ref.astype(jnp.float32),
                        atol=2e-2, rtol=2e-2)

    # Batched path (grid over rows, "parallel" -> shards across v7x TCs).
    Bb = 192
    xb = jax.random.normal(jax.random.PRNGKey(1), (Bb, C_IN), dtype=jnp.float32)
    out_b = to_weights_dtype_forward(xb, w1, b1, w2, b2, row_tile=64)
    out_b = jax.block_until_ready(out_b)
    ref_b = _reference(xb, w1, b1, w2, b2)
    assert out_b.dtype == jnp.bfloat16
    assert out_b.shape == (Bb, HID)
    assert jnp.allclose(out_b.astype(jnp.float32), ref_b.astype(jnp.float32),
                        atol=2e-2, rtol=2e-2)

    print("KERNEL_OK")
</pallas_src>

<mosaic_0001>
module attributes {stable_mosaic.version = 11 : i64} {
  func.func @_mlp_cast_kernel(%arg0: memref<16x16xbf16, #tpu.memory_space<vmem>>, %arg1: memref<16x256xbf16, #tpu.memory_space<vmem>>, %arg2: memref<1x256xf32, #tpu.memory_space<vmem>>, %arg3: memref<256x256xbf16, #tpu.memory_space<vmem>>, %arg4: memref<1x256xf32, #tpu.memory_space<vmem>>, %arg5: memref<16x256xbf16, #tpu.memory_space<vmem>>) attributes {dimension_semantics = [], scalar_prefetch = 0 : i64, scratch_operands = 0 : i64, tpu.core_type = #tpu.core_type<tc>} {
    %c0 = arith.constant 0 : index
    %c0_0 = arith.constant 0 : index
    %0 = vector.load %arg0[%c0, %c0_0] : memref<16x16xbf16, #tpu.memory_space<vmem>>, vector<16x16xbf16>
    %c0_1 = arith.constant 0 : index
    %c0_2 = arith.constant 0 : index
    %1 = vector.load %arg1[%c0_1, %c0_2] : memref<16x256xbf16, #tpu.memory_space<vmem>>, vector<16x256xbf16>
    %cst = arith.constant dense<0.000000e+00> : vector<16x256xf32>
    %2 = tpu.matmul %0, %1, %cst {dimension_numbers = #tpu.dot_dimension_numbers<[1], [0], [0], [1], [0, 0, 1, 1], [], []>} : vector<16x16xbf16>, vector<16x256xbf16>, vector<16x256xf32> -> vector<16x256xf32>
    %c0_3 = arith.constant 0 : index
    %c0_4 = arith.constant 0 : index
    %3 = vector.load %arg2[%c0_3, %c0_4] : memref<1x256xf32, #tpu.memory_space<vmem>>, vector<1x256xf32>
    %4 = vector.broadcast %3 : vector<1x256xf32> to vector<16x256xf32>
    %5 = arith.addf %2, %4 : vector<16x256xf32>
    %6 = arith.negf %5 : vector<16x256xf32>
    %7 = math.exp %6 : vector<16x256xf32>
    %cst_5 = arith.constant 1.000000e+00 : f32
    %8 = vector.broadcast %cst_5 : f32 to vector<16x256xf32>
    %9 = arith.addf %8, %7 : vector<16x256xf32>
    %10 = arith.divf %8, %9 : vector<16x256xf32>
    %11 = arith.mulf %5, %10 : vector<16x256xf32>
    %12 = arith.truncf %11 : vector<16x256xf32> to vector<16x256xbf16>
    %c0_6 = arith.constant 0 : index
    %c0_7 = arith.constant 0 : index
    %13 = vector.load %arg3[%c0_6, %c0_7] : memref<256x256xbf16, #tpu.memory_space<vmem>>, vector<256x256xbf16>
    %cst_8 = arith.constant dense<0.000000e+00> : vector<16x256xf32>
    %14 = tpu.matmul %12, %13, %cst_8 {dimension_numbers = #tpu.dot_dimension_numbers<[1], [0], [0], [1], [0, 0, 1, 1], [], []>} : vector<16x256xbf16>, vector<256x256xbf16>, vector<16x256xf32> -> vector<16x256xf32>
    %c0_9 = arith.constant 0 : index
    %c0_10 = arith.constant 0 : index
    %15 = vector.load %arg4[%c0_9, %c0_10] : memref<1x256xf32, #tpu.memory_space<vmem>>, vector<1x256xf32>
    %16 = vector.broadcast %15 : vector<1x256xf32> to vector<16x256xf32>
    %17 = arith.addf %14, %16 : vector<16x256xf32>
    %18 = arith.truncf %17 : vector<16x256xf32> to vector<16x256xbf16>
    %c0_11 = arith.constant 0 : index
    %c0_12 = arith.constant 0 : index
    %19 = vector.load %arg5[%c0_11, %c0_12] : memref<16x256xbf16, #tpu.memory_space<vmem>>, vector<16x256xbf16>
    tpu.vector_store %arg5[%c0_11, %c0_12], %18 {strides = array<i32>} : memref<16x256xbf16, #tpu.memory_space<vmem>>, vector<16x256xbf16>,
    return
  }
}

</mosaic_0001>

<bundles_post_ra>
// kernel: tpu_custom_call.1
= control target key start
LH: loop header
LB: loop body
LE: loop exit
PB: predicated region body
PF: predicated region fallthrough
CT: control target
= control target key end

     0   :  { %10 = vsyncpa [#allocation3], 0  ;;  %s723_s0 = inlined_call_operand.hbm [shape: bf16[16,16], index: 0, kind: input, shape index: {}]   ;;  %s724_s1 = inlined_call_operand.hbm [shape: bf16[16,256], index: 1, kind: input, shape index: {}]   ;;  %s725_s2 = inlined_call_operand.vmem [shape: f32[1,256], index: 2, kind: input, shape index: {}]   ;;  %s726_s3 = inlined_call_operand.hbm [shape: bf16[256,256], index: 3, kind: input, shape index: {}]   ;;  %s727_s4 = inlined_call_operand.vmem [shape: f32[1,256], index: 4, kind: input, shape index: {}]   ;;  %s728_s5 = inlined_call_operand.hbm [shape: bf16[16,256], index: 5, kind: output, shape index: {}]  }
   0x1   :  { %11 = vsyncpa [#allocation6], 0 }
   0x2   :  { %12 = vsyncpa [#allocation4], 0  ;;  %s657_s18 = smov [#allocation5]  }
   0x3   :  { %s30_s19 = sshll.u32 %s657_s18, 4  ;;  %s31_s19 = int_to_ptr.vmem [resolvable:$true] %s30_s19 }
   0x4   :  { %s579_s20 = scalar_lea.vmem %s31_s19, 256  ;;  %p584_p1 = scmp.lt.s32.totalorder %s31_s19, %s31_s19 }
   0x5   :  { %p580_p0 = scmp.ne.s32.totalorder %s31_s19, %s579_s20  ;;  %p585_p2 = scmp.lt.s32.totalorder %s579_s20, %s579_s20 }
   0x7   :  { %p586_p3 = por %p585_p2, %p584_p1 }
   0x9   :  { %p587_p4 = pnand %p586_p3, %p580_p0 }
   0xb   :  { %590 = shalt.err (!%p587_p4)
}
   0xc   :  { %s658_s21 = smov 128   ;;  %s659_s22 = smov 8  }
   0xd   :  { %36 = dma.hbm_to_vmem [thread:$0]  %s724_s1, 256, %s31_s19, [#allocation6], %s658_s21, %s658_s21, %s659_s22  }
   0xe   :  { %s660_s25 = smov [#allocation2]  }
   0xf   :  { %s18_s26 = sshll.u32 %s660_s25, 4  ;;  %s19_s26 = int_to_ptr.vmem [resolvable:$true] %s18_s26 }
  0x10   :  { %s599_s27 = scalar_lea.vmem %s19_s26, 128  ;;  %p604_p6 = scmp.lt.s32.totalorder %s19_s26, %s19_s26 }
  0x11   :  { %p600_p5 = scmp.ne.s32.totalorder %s19_s26, %s599_s27  ;;  %p605_p7 = scmp.lt.s32.totalorder %s599_s27, %s599_s27 }
  0x13   :  { %p606_p8 = por %p605_p7, %p604_p6 }
  0x15   :  { %p607_p9 = pnand %p606_p8, %p600_p5 }
  0x17   :  { %610 = shalt.err (!%p607_p9)
}
  0x18   :  { %s661_s28 = smov 64   ;;  %s662_s29 = smov 4  }
  0x19   :  { %24 = dma.hbm_to_vmem [thread:$0]  %s723_s0, 128, %s19_s26, [#allocation3], %s661_s28, %s661_s28, %s662_s29  }
  0x1a   :  { %s663_s7 = smov [#allocation7]  }
  0x1b   :  { %s44_s8 = sshll.u32 %s663_s7, 4  ;;  %s45_s8 = int_to_ptr.vmem [resolvable:$true] %s44_s8 }
  0x1c   :  { %s619_s1 = scalar_lea.vmem %s45_s8, 4096  ;;  %p624_p11 = scmp.lt.s32.totalorder %s45_s8, %s45_s8 }
  0x1d   :  { %p620_p10 = scmp.ne.s32.totalorder %s45_s8, %s619_s1  ;;  %p625_p12 = scmp.lt.s32.totalorder %s619_s1, %s619_s1 }
  0x1f   :  { %p626_p13 = por %p625_p12, %p624_p11 }
  0x21   :  { %p627_p0 = pnand %p626_p13, %p620_p10 }
  0x23   :  { %630 = shalt.err (!%p627_p0)
}
  0x24   :  { %50 = dma.hbm_to_vmem [thread:$0]  %s726_s3, 4096, %s45_s8, [#allocation6], %s658_s21, %s658_s21, %s659_s22  }
  0x25   :  { %651 = dma.done.wait [#allocation3], 128  }
  0x26   :  { %652 = vsyncadd [#allocation3], 4294967168 }
  0x27   :  { %653 = dma.done.wait [#allocation6], 4352  }
  0x28   :  { %654 = vsyncadd [#allocation6], 4294962944  ;;  %v664_v0 = vmov 0   ;;  %v503_v1 = vld [vmem:[#allocation5 + $0x4] ss:$8 sps:$4 sm:$0xff]   ;;  %v506_v3 = vld [vmem:[#allocation2] sm:$0xff]   ;;  %v69_v36 = vlaneseq }
  0x29   :  { %130 = vmatprep.mubr.bf16.mxu0 %v664_v0  ;;  %v505_v2 = vld [vmem:[#allocation5] ss:$8 sps:$4 sm:$0xff]   ;;  %112 = vmatprep.subr.bf16.mxu0 %v503_v1  ;;  %vm94_vm0 = vcmask 130048   ;;  %v507_v4 = vld [vmem:[#allocation7 + $0x74] ss:$8 sps:$4 sm:$0xff]   ;;  %s665_s12 = smov [#allocation8]  }
  0x2a   :  { %113 = vmatpush1.bf16.msra.mxu0 %v505_v2  ;;  %v509_v5 = vld [vmem:[#allocation7 + $0x70] ss:$8 sps:$4 sm:$0xff]   ;;  %v510_v6 = vld [vmem:[#allocation7 + $0x64] ss:$8 sps:$4 sm:$0xff]   ;;  %375 = vmatprep.subr.bf16.mxu1 %v507_v4  ;;  %v512_v7 = vld [vmem:[#allocation7 + $0x60] ss:$8 sps:$4 sm:$0xff]  }
  0x2b   :  { %376 = vmatpush1.bf16.msra.mxu1 %v509_v5  ;;  %v513_v8 = vld [vmem:[#allocation7 + $0x54] ss:$8 sps:$4 sm:$0xff]   ;;  %v515_v9 = vld [vmem:[#allocation7 + $0x50] ss:$8 sps:$4 sm:$0xff]   ;;  %v516_v10 = vld [vmem:[#allocation7 + $0x44] ss:$8 sps:$4 sm:$0xff]  }
  0x2c   :  { %377 = vmatprep.subr.bf16.mxu1 %v510_v6  ;;  %v518_v11 = vld [vmem:[#allocation7 + $0x40] ss:$8 sps:$4 sm:$0xff]   ;;  %v519_v12 = vld [vmem:[#allocation7 + $0x34] ss:$8 sps:$4 sm:$0xff]   ;;  %v521_v13 = vld [vmem:[#allocation7 + $0x30] ss:$8 sps:$4 sm:$0xff]  }
  0x2d   :  { %453 = vmatmul.mubr.msk.bf16.vlgmr.msra.gmra.mxu0 %vm94_vm0, %v506_v3  ;;  %v522_v14 = vld [vmem:[#allocation7 + $0x24] ss:$8 sps:$4 sm:$0xff]   ;;  %v524_v15 = vld [vmem:[#allocation7 + $0x20] ss:$8 sps:$4 sm:$0xff]   ;;  %v525_v16 = vld [vmem:[#allocation7 + $0x14] ss:$8 sps:$4 sm:$0xff]  }
  0x2e   :  { %v527_v17 = vld [vmem:[#allocation7 + $0x10] ss:$8 sps:$4 sm:$0xff]   ;;  %v528_v18 = vld [vmem:[#allocation7 + $0x4] ss:$8 sps:$4 sm:$0xff]   ;;  %v530_v19 = vld [vmem:[#allocation7] ss:$8 sps:$4 sm:$0xff]  }
  0x2f   :  { %378 = vmatpush1.bf16.msra.mxu1 %v512_v7  ;;  %v531_v20 = vld [vmem:[#allocation7 + $0xf4] ss:$8 sps:$4 sm:$0xff]   ;;  %v533_v21 = vld [vmem:[#allocation7 + $0xf0] ss:$8 sps:$4 sm:$0xff]   ;;  %v534_v22 = vld [vmem:[#allocation7 + $0xe4] ss:$8 sps:$4 sm:$0xff]  }
  0x30   :  { %379 = vmatprep.subr.bf16.mxu1 %v513_v8  ;;  %v536_v23 = vld [vmem:[#allocation7 + $0xe0] ss:$8 sps:$4 sm:$0xff]   ;;  %v537_v24 = vld [vmem:[#allocation7 + $0xd4] ss:$8 sps:$4 sm:$0xff]   ;;  %v539_v25 = vld [vmem:[#allocation7 + $0xd0] ss:$8 sps:$4 sm:$0xff]  }
  0x31   :  { %v540_v26 = vld [vmem:[#allocation7 + $0xc4] ss:$8 sps:$4 sm:$0xff]   ;;  %v542_v27 = vld [vmem:[#allocation7 + $0xc0] ss:$8 sps:$4 sm:$0xff]   ;;  %v543_v28 = vld [vmem:[#allocation7 + $0xb4] ss:$8 sps:$4 sm:$0xff]  }
  0x32   :  { %v545_v29 = vld [vmem:[#allocation7 + $0xb0] ss:$8 sps:$4 sm:$0xff]   ;;  %v546_v30 = vld [vmem:[#allocation7 + $0xa4] ss:$8 sps:$4 sm:$0xff]   ;;  %v548_v31 = vld [vmem:[#allocation7 + $0xa0] ss:$8 sps:$4 sm:$0xff]  }
  0x33   :  { %380 = vmatpush1.bf16.msra.mxu1 %v515_v9  ;;  %v549_v32 = vld [vmem:[#allocation7 + $0x94] ss:$8 sps:$4 sm:$0xff]   ;;  %v551_v33 = vld [vmem:[#allocation7 + $0x90] ss:$8 sps:$4 sm:$0xff]   ;;  %v552_v34 = vld [vmem:[#allocation7 + $0x84] ss:$8 sps:$4 sm:$0xff]  }
  0x34   :  { %381 = vmatprep.subr.bf16.mxu1 %v516_v10  ;;  %v554_v35 = vld [vmem:[#allocation7 + $0x80] ss:$8 sps:$4 sm:$0xff]   ;;  %v70_v37 = vshrl.u32 %v69_v36, 7  ;;  %s437_s13 = sshll.u32 %s665_s12, 4  ;;  %s438_s13 = int_to_ptr.vmem [resolvable:$true] %s437_s13 }
  0x35   :  { %v67_v39 = vld [vmem:[%s725_s2] sm:$0x3]  ;;  %s631_s14 = scalar_lea.vmem %s438_s13, 256  ;;  %p636_p2 = scmp.lt.s32.totalorder %s438_s13, %s438_s13 }
  0x36   :  { %v71_v38 = vsub.s32 0, %v70_v37  ;;  %v75_v40 = vsub.s32 1, %v70_v37  ;;  %v203_v9 = vld [vmem:[%s727_s4] sm:$0x3]  ;;  %p632_p1 = scmp.ne.s32.totalorder %s438_s13, %s631_s14  ;;  %p637_p3 = scmp.lt.s32.totalorder %s631_s14, %s631_s14 }
  0x37   :  { %382 = vmatpush1.bf16.msra.mxu1 %v518_v11 }
  0x38   :  { %383 = vmatprep.subr.bf16.mxu1 %v519_v12  ;;  %v72_v41 = vrot.slane %v67_v39, %v71_v38  ;;  %v76_v42 = vrot.slane %v67_v39, %v75_v40  ;;  %v208_v10 = vrot.slane %v203_v9, %v71_v38  ;;  %v212_v11 = vrot.slane %v203_v9, %v75_v40  ;;  %p638_p4 = por %p637_p3, %p636_p2 }
  0x3a   :  { %p639_p5 = pnand %p638_p4, %p632_p1 }
  0x3b   :  { %384 = vmatpush1.bf16.msra.mxu1 %v521_v13 }
  0x3c   :  { %385 = vmatprep.subr.bf16.mxu1 %v522_v14 }
  0x3f   :  { %386 = vmatpush1.bf16.msra.mxu1 %v524_v15 }
  0x40   :  { %387 = vmatprep.subr.bf16.mxu1 %v525_v16 }
  0x43   :  { %388 = vmatpush1.bf16.msra.mxu1 %v527_v17 }
  0x44   :  { %389 = vmatprep.subr.bf16.mxu1 %v528_v18 }
  0x47   :  { %390 = vmatpush1.bf16.msra.mxu1 %v530_v19 }
  0x48   :  { %391 = vmatprep.subr.bf16.mxu1 %v531_v20 }
  0x4b   :  { %392 = vmatpush2.bf16.msra.mxu1 %v533_v21 }
  0x4c   :  { %393 = vmatprep.subr.bf16.mxu1 %v534_v22 }
  0x4f   :  { %394 = vmatpush2.bf16.msra.mxu1 %v536_v23 }
  0x50   :  { %395 = vmatprep.subr.bf16.mxu1 %v537_v24 }
  0x53   :  { %396 = vmatpush2.bf16.msra.mxu1 %v539_v25 }
  0x54   :  { %397 = vmatprep.subr.bf16.mxu1 %v540_v26 }
  0x57   :  { %398 = vmatpush2.bf16.msra.mxu1 %v542_v27 }
  0x58   :  { %399 = vmatprep.subr.bf16.mxu1 %v543_v28 }
  0x5b   :  { %400 = vmatpush2.bf16.msra.mxu1 %v545_v29 }
  0x5c   :  { %401 = vmatprep.subr.bf16.mxu1 %v546_v30 }
  0x5f   :  { %402 = vmatpush2.bf16.msra.mxu1 %v548_v31 }
  0x60   :  { %403 = vmatprep.subr.bf16.mxu1 %v549_v32 }
  0x63   :  { %404 = vmatpush2.bf16.msra.mxu1 %v551_v33 }
  0x64   :  { %405 = vmatprep.subr.bf16.mxu1 %v552_v34 }
  0x67   :  { %406 = vmatpush2.bf16.msra.mxu1 %v554_v35 }
  0xed   :  { %v132_v43 = vpop.f32.mrf.mxu0 }
  0xee   :  { %v133_v44 = vadd.f32 %v132_v43, %v72_v41 }
  0xef   :  { %v134_v45 = vpop.f32.mrf.mxu0 }
  0xf0   :  { %v454_v46 = vmul.f32 -1.442695, %v133_v44  ;;  %v135_v47 = vadd.f32 %v134_v45, %v76_v42 }
  0xf1   :  { %v136_v48 = vpop.f32.mrf.mxu0 }
  0xf2   :  { %v455_v49 = vmul.f32 -1.442695, %v135_v47  ;;  %v137_v50 = vadd.f32 %v136_v48, %v72_v41  ;;  %555 = vpow2.f32 %v454_v46 }
  0xf3   :  { %v138_v51 = vpop.f32.mrf.mxu0 }
  0xf4   :  { %557 = vpow2.f32 %v455_v49  ;;  %v456_v52 = vmul.f32 -1.442695, %v137_v50  ;;  %v139_v53 = vadd.f32 %v138_v51, %v76_v42 }
  0xf6   :  { %559 = vpow2.f32 %v456_v52  ;;  %v457_v54 = vmul.f32 -1.442695, %v139_v53 }
  0xf8   :  { %561 = vpow2.f32 %v457_v54 }
  0xff   :  { %v556_v55 = vpop.eup %555 }
 0x100   :  { %v153_v59 = vadd.f32 1.0, %v556_v55 }
 0x101   :  { %v558_v56 = vpop.eup %557 }
 0x102   :  { %v154_v57 = vadd.f32 1.0, %v558_v56 }
 0x103   :  { %v560_v58 = vpop.eup %559 }
 0x104   :  { %v155_v60 = vadd.f32 1.0, %v560_v58  ;;  %563 = vrcp.f32 %v154_v57 }
 0x105   :  { %v562_v61 = vpop.eup %561 }
 0x106   :  { %565 = vrcp.f32 %v155_v60  ;;  %v156_v62 = vadd.f32 1.0, %v562_v61 }
 0x107   :  { %567 = vrcp.f32 %v153_v59 }
 0x108   :  { %569 = vrcp.f32 %v156_v62 }
 0x111   :  { %v564_v63 = vpop.eup %563 }
 0x112   :  { %v166_v4 = vmul.f32 %v564_v63, %v135_v47 }
 0x113   :  { %v566_v0 = vpop.eup %565 }
 0x114   :  { %v568_v1 = vpop.eup %567  ;;  %v167_v3 = vmul.f32 %v566_v0, %v137_v50 }
 0x115   :  { %v570_v2 = vpop.eup %569  ;;  %v165_v6 = vmul.f32 %v568_v1, %v133_v44 }
 0x116   :  { %v168_v5 = vmul.f32 %v570_v2, %v139_v53 }
 0x117   :  { %v169_v8 = vpack.c.bf16 %v167_v3, %v165_v6 }
 0x118   :  { %v170_v7 = vpack.c.bf16 %v168_v5, %v166_v4 }
 0x11a   :  { %407 = vmatprep.mubr.bf16.mxu1 %v170_v7 }
 0x11b   :  { %408 = vmatmul.mubr.bf16.vlgmr.msra.gmra.mxu1 %v169_v8 }
 0x1db   :  { %v409_v12 = vpop.f32.mrf.mxu1 }
 0x1dc   :  { %v410_v14 = vadd.f32 %v409_v12, %v208_v10 }
 0x1dd   :  { %v411_v13 = vpop.f32.mrf.mxu1 }
 0x1de   :  { %v412_v15 = vadd.f32 %v411_v13, %v212_v11 }
 0x1df   :  { %v413_v16 = vpop.f32.mrf.mxu1 }
 0x1e0   :  { %v492_v17 = vpack.c.bf16 %v412_v15, %v410_v14  ;;  %v414_v19 = vadd.f32 %v413_v16, %v208_v10 }
 0x1e1   :  { %v415_v18 = vpop.f32.mrf.mxu1 }
 0x1e2   :  { %430 = vst [vmem:[#allocation8] sm:$0xff] %v492_v17  ;;  %v416_v20 = vadd.f32 %v415_v18, %v212_v11 }
 0x1e4   :  { %v493_v21 = vpack.c.bf16 %v416_v20, %v414_v19 }
 0x1e6   :  { %431 = vst [vmem:[#allocation8 + $0x8] sm:$0xff] %v493_v21 }
 0x1e7   :  { %642 = shalt.err (!%p639_p5)
}
 0x1e8   :  { %443 = dma.vmem_to_hbm [thread:$0]  %s438_s13, 256, %s728_s5, [#allocation4], %s658_s21, %s658_s21, %s659_s22  }
 0x1e9   :  { %655 = dma.done.wait [#allocation4], 256  }
 0x1ea   :  { %656 = vsyncadd [#allocation4], 4294967040 }
 0x1eb   :  { %447 = vsyncpa [#allocation3], 1 }
 0x1ec   :  { %448 = vsyncpa [#allocation6], 1 }
 0x1ed   :  { %449 = vsyncpa [#allocation4], 1 }

</bundles_post_ra>
